<compile_context>
chip_gen: v5e
topology: v5e:2x2
jax: 0.10.0
libtpu: 0.0.40
codegen_flags: <defaults>
</compile_context>

<pallas_src>
import math

import jax
import jax.numpy as jnp
from jax import lax
from jax.experimental import pallas as pl
from jax.experimental.pallas import tpu as pltpu

LAYERS = [32, 64, 64, 16]      # `layers` argument of DenseNet
MAX_BATCH_TILE = 8192          # max batch rows per grid step
MIN_BATCH_TILE = 512
VMEM_LIMIT_BYTES = 48 << 20    # headroom for double-buffered 8192-row tiles on every gen


def _elementwise_dtype():
    """bf16 bias/ReLU/cast on chips with a native bf16 VPU (v6e/v7x), f32 otherwise."""
    try:
        kind = jax.devices()[0].device_kind.lower()
    except Exception:
        return jnp.bfloat16
    if any(v in kind for v in ("v2", "v3", "v4", "v5")):
        return jnp.float32
    return jnp.bfloat16


def _round_up(x, m):
    return ((x + m - 1) // m) * m


def _choose_batch_tile(batch, max_tile=MAX_BATCH_TILE, min_tile=MIN_BATCH_TILE):
    """Largest power-of-two tile that still leaves >= ~4 grid steps (pipelining + megacore),
    clamped to the batch itself (rounded to the 128-lane granule)."""
    tile = max_tile
    while tile > min_tile and batch < 4 * tile:
        tile //= 2
    return min(tile, _round_up(batch, 128))


def _bias_relu_to_bf16(acc_f32, bias):
    """Bias-add + ReLU in the bias dtype (bf16 on v6e/v7x, f32 on v4/v5), emit bf16 for the
    next MXU pass.  Fused so only the bf16 tensor round-trips VMEM."""
    h = acc_f32.astype(bias.dtype) + bias
    return jnp.maximum(h, 0.0).astype(jnp.bfloat16)


def densenet_kernel(x_ref, w0_ref, b0_ref, w1_ref, b1_ref, w2_ref, b2_ref, o_ref):
    """Fused 3-layer MLP for one batch tile.

    The x tile arrives in its natural (T, d_in) layout; the MXU absorbs the transpose, so
    every intermediate is feature-major (features, T) with the batch on the 128-lane axis.
    """
    xb = x_ref[...].astype(jnp.bfloat16)                               # (T, d_in)

    # Layer 0: W0 (d1, d_in) contracted with x (T, d_in) on their last dims -> (d1, T).
    acc = lax.dot_general(w0_ref[...], xb, (((1,), (1,)), ((), ())),
                          preferred_element_type=jnp.float32)
    h = _bias_relu_to_bf16(acc, b0_ref[...])

    # Layer 1: W1 (d2, d1) @ h (d1, T) -> (d2, T).
    acc = lax.dot_general(w1_ref[...], h, (((1,), (0,)), ((), ())),
                          preferred_element_type=jnp.float32)
    h = _bias_relu_to_bf16(acc, b1_ref[...])

    # Layer 2 (no activation): W2 (d_out, d2) @ h (d2, T) -> (d_out, T); bias in f32.
    acc = lax.dot_general(w2_ref[...], h, (((1,), (0,)), ((), ())),
                          preferred_element_type=jnp.float32)
    o_ref[...] = (acc + b2_ref[...]).astype(o_ref.dtype)              # lane-dense store


def prepare_params(params, elementwise_dtype=None):
    """One-time parameter prep (hoisted out of the forward pass): weights -> bf16 in native
    PyTorch (out, in) layout; biases -> column vectors, hidden-layer biases in the chip's
    elementwise dtype, output bias in f32."""
    if elementwise_dtype is None:
        elementwise_dtype = _elementwise_dtype()
    (w0, b0), (w1, b1), (w2, b2) = params
    return (w0.astype(jnp.bfloat16), b0.reshape(-1, 1).astype(elementwise_dtype),
            w1.astype(jnp.bfloat16), b1.reshape(-1, 1).astype(elementwise_dtype),
            w2.astype(jnp.bfloat16), b2.reshape(-1, 1).astype(jnp.float32))


def densenet_forward(x, prep, *, out_dtype=jnp.float32, transpose_output=True,
                     max_batch_tile=MAX_BATCH_TILE):
    """x: (B, LAYERS[0]).  prep: output of prepare_params.
    Returns (B, LAYERS[-1]) (or feature-major (LAYERS[-1], B) if transpose_output=False)."""
    batch, d_in = x.shape
    w0, b0, w1, b1, w2, b2 = prep
    assert d_in == w0.shape[1]
    d_out = w2.shape[0]

    tile = _choose_batch_tile(batch, max_batch_tile)
    n_tiles = pl.cdiv(batch, tile)        # ragged last block: masked writeback, no padding

    def const_spec(arr):                  # constant operands: block index never changes
        return pl.BlockSpec(arr.shape, lambda i: (0, 0))

    flops = 2 * batch * sum(int(w.shape[0]) * int(w.shape[1]) for w in (w0, w1, w2))
    bytes_accessed = int(
        x.size * x.dtype.itemsize
        + batch * d_out * jnp.dtype(out_dtype).itemsize
        + sum(int(a.size) * a.dtype.itemsize for a in prep))

    out_fm = pl.pallas_call(
        densenet_kernel,
        out_shape=jax.ShapeDtypeStruct((d_out, batch), out_dtype),
        grid_spec=pltpu.PrefetchScalarGridSpec(
            num_scalar_prefetch=0,
            grid=(n_tiles,),
            in_specs=[
                pl.BlockSpec((tile, d_in), lambda i: (i, 0)),   # x in its natural layout
                const_spec(w0), const_spec(b0),
                const_spec(w1), const_spec(b1),
                const_spec(w2), const_spec(b2),
            ],
            out_specs=pl.BlockSpec((d_out, tile), lambda i: (0, i)),  # lane-dense output
        ),
        compiler_params=pltpu.CompilerParams(
            dimension_semantics=("parallel",),
            vmem_limit_bytes=VMEM_LIMIT_BYTES,
        ),
        cost_estimate=pl.CostEstimate(
            flops=flops, transcendentals=0, bytes_accessed=bytes_accessed),
    )(x, w0, b0, w1, b1, w2, b2)

    return out_fm.T if transpose_output else out_fm


def init_params(key):
    """nn.Linear default init: uniform(-1/sqrt(fan_in), 1/sqrt(fan_in)); PyTorch layout
    W (out, in), b (out,)."""
    params = []
    for j in range(len(LAYERS) - 1):
        fan_in, fan_out = LAYERS[j], LAYERS[j + 1]
        key, kw, kb = jax.random.split(key, 3)
        bound = 1.0 / math.sqrt(fan_in)
        w = jax.random.uniform(kw, (fan_out, fan_in), jnp.float32, -bound, bound)
        b = jax.random.uniform(kb, (fan_out,), jnp.float32, -bound, bound)
        params.append((w, b))
    return params


def densenet_reference(x, prep):
    """Pure-JAX reference mirroring the kernel's numerics (bf16 MXU inputs, f32 accumulation,
    same elementwise dtype)."""
    w0, b0, w1, b1, w2, b2 = prep
    xb = x.astype(jnp.bfloat16)
    acc = lax.dot_general(w0, xb, (((1,), (1,)), ((), ())), preferred_element_type=jnp.float32)
    h = _bias_relu_to_bf16(acc, b0)
    acc = lax.dot_general(w1, h, (((1,), (0,)), ((), ())), preferred_element_type=jnp.float32)
    h = _bias_relu_to_bf16(acc, b1)
    acc = lax.dot_general(w2, h, (((1,), (0,)), ((), ())), preferred_element_type=jnp.float32)
    return jnp.transpose(acc + b2)


if __name__ == "__main__":
    key = jax.random.PRNGKey(0)
    key, kx = jax.random.split(key)

    B = 1000  # not a multiple of the tile: exercises the ragged last block + 2 grid steps
    x = jax.random.normal(kx, (B, LAYERS[0]), jnp.float32)

    prep = prepare_params(init_params(key))

    out = densenet_forward(x, prep)
    out = jax.block_until_ready(out)

    ref = densenet_reference(x, prep)
    assert out.shape == (B, LAYERS[-1])
    assert jnp.allclose(out, ref, atol=2e-3, rtol=2e-3), "Pallas output mismatch vs reference"

    print("KERNEL_OK")
</pallas_src>

<mosaic_0001>
module attributes {stable_mosaic.version = 11 : i64} {
  func.func @densenet_kernel(%arg0: i32, %arg1: memref<512x32xf32, #tpu.memory_space<vmem>>, %arg2: memref<64x32xbf16, #tpu.memory_space<vmem>>, %arg3: memref<64x1xbf16, #tpu.memory_space<vmem>>, %arg4: memref<64x64xbf16, #tpu.memory_space<vmem>>, %arg5: memref<64x1xbf16, #tpu.memory_space<vmem>>, %arg6: memref<16x64xbf16, #tpu.memory_space<vmem>>, %arg7: memref<16x1xf32, #tpu.memory_space<vmem>>, %arg8: memref<16x512xf32, #tpu.memory_space<vmem>>) attributes {dimension_semantics = [#tpu.dimension_semantics<parallel>], iteration_bounds = array<i64: 2>, scalar_prefetch = 0 : i64, scratch_operands = 0 : i64, tpu.core_type = #tpu.core_type<tc>, window_params = [{transform_indices = @transform_0, window_bounds = array<i64: 512, 32>}, {pipeline_mode = #tpu.pipeline_mode<synchronous>, transform_indices = @transform_1, window_bounds = array<i64: 64, 32>}, {pipeline_mode = #tpu.pipeline_mode<synchronous>, transform_indices = @transform_2, window_bounds = array<i64: 64, 1>}, {pipeline_mode = #tpu.pipeline_mode<synchronous>, transform_indices = @transform_3, window_bounds = array<i64: 64, 64>}, {pipeline_mode = #tpu.pipeline_mode<synchronous>, transform_indices = @transform_4, window_bounds = array<i64: 64, 1>}, {pipeline_mode = #tpu.pipeline_mode<synchronous>, transform_indices = @transform_5, window_bounds = array<i64: 16, 64>}, {pipeline_mode = #tpu.pipeline_mode<synchronous>, transform_indices = @transform_6, window_bounds = array<i64: 16, 1>}, {transform_indices = @transform_7, window_bounds = array<i64: 16, 512>}]} {
    %c0 = arith.constant 0 : index
    %c0_0 = arith.constant 0 : index
    %0 = vector.load %arg1[%c0, %c0_0] : memref<512x32xf32, #tpu.memory_space<vmem>>, vector<512x32xf32>
    %1 = arith.truncf %0 : vector<512x32xf32> to vector<512x32xbf16>
    %c0_1 = arith.constant 0 : index
    %c0_2 = arith.constant 0 : index
    %2 = vector.load %arg2[%c0_1, %c0_2] : memref<64x32xbf16, #tpu.memory_space<vmem>>, vector<64x32xbf16>
    %cst = arith.constant dense<0.000000e+00> : vector<64x512xf32>
    %3 = tpu.matmul %2, %1, %cst {dimension_numbers = #tpu.dot_dimension_numbers<[1], [1], [0], [0], [0, 0, 1, 0], [], []>} : vector<64x32xbf16>, vector<512x32xbf16>, vector<64x512xf32> -> vector<64x512xf32>
    %c0_3 = arith.constant 0 : index
    %c0_4 = arith.constant 0 : index
    %4 = vector.load %arg3[%c0_3, %c0_4] : memref<64x1xbf16, #tpu.memory_space<vmem>>, vector<64x1xbf16>
    %5 = arith.truncf %3 : vector<64x512xf32> to vector<64x512xbf16>
    %6 = vector.broadcast %4 : vector<64x1xbf16> to vector<64x512xbf16>
    %7 = arith.addf %5, %6 : vector<64x512xbf16>
    %cst_5 = arith.constant 0.000000e+00 : bf16
    %8 = vector.broadcast %cst_5 : bf16 to vector<64x512xbf16>
    %9 = arith.maximumf %7, %8 : vector<64x512xbf16>
    %c0_6 = arith.constant 0 : index
    %c0_7 = arith.constant 0 : index
    %10 = vector.load %arg4[%c0_6, %c0_7] : memref<64x64xbf16, #tpu.memory_space<vmem>>, vector<64x64xbf16>
    %cst_8 = arith.constant dense<0.000000e+00> : vector<64x512xf32>
    %11 = tpu.matmul %10, %9, %cst_8 {dimension_numbers = #tpu.dot_dimension_numbers<[1], [0], [0], [1], [0, 0, 1, 1], [], []>} : vector<64x64xbf16>, vector<64x512xbf16>, vector<64x512xf32> -> vector<64x512xf32>
    %c0_9 = arith.constant 0 : index
    %c0_10 = arith.constant 0 : index
    %12 = vector.load %arg5[%c0_9, %c0_10] : memref<64x1xbf16, #tpu.memory_space<vmem>>, vector<64x1xbf16>
    %13 = arith.truncf %11 : vector<64x512xf32> to vector<64x512xbf16>
    %14 = vector.broadcast %12 : vector<64x1xbf16> to vector<64x512xbf16>
    %15 = arith.addf %13, %14 : vector<64x512xbf16>
    %cst_11 = arith.constant 0.000000e+00 : bf16
    %16 = vector.broadcast %cst_11 : bf16 to vector<64x512xbf16>
    %17 = arith.maximumf %15, %16 : vector<64x512xbf16>
    %c0_12 = arith.constant 0 : index
    %c0_13 = arith.constant 0 : index
    %18 = vector.load %arg6[%c0_12, %c0_13] : memref<16x64xbf16, #tpu.memory_space<vmem>>, vector<16x64xbf16>
    %cst_14 = arith.constant dense<0.000000e+00> : vector<16x512xf32>
    %19 = tpu.matmul %18, %17, %cst_14 {dimension_numbers = #tpu.dot_dimension_numbers<[1], [0], [0], [1], [0, 0, 1, 1], [], []>} : vector<16x64xbf16>, vector<64x512xbf16>, vector<16x512xf32> -> vector<16x512xf32>
    %c0_15 = arith.constant 0 : index
    %c0_16 = arith.constant 0 : index
    %20 = vector.load %arg7[%c0_15, %c0_16] : memref<16x1xf32, #tpu.memory_space<vmem>>, vector<16x1xf32>
    %21 = vector.broadcast %20 : vector<16x1xf32> to vector<16x512xf32>
    %22 = arith.addf %19, %21 : vector<16x512xf32>
    %c0_17 = arith.constant 0 : index
    %c0_18 = arith.constant 0 : index
    %23 = vector.load %arg8[%c0_17, %c0_18] : memref<16x512xf32, #tpu.memory_space<vmem>>, vector<16x512xf32>
    tpu.vector_store %arg8[%c0_17, %c0_18], %22 {strides = array<i32>} : memref<16x512xf32, #tpu.memory_space<vmem>>, vector<16x512xf32>,
    return
  }
  func.func @transform_0(%arg0: i32) -> (i32, i32) {
    %c0_i32 = arith.constant 0 : i32
    %c0_i32_0 = arith.constant 0 : i32
    return %arg0, %c0_i32 : i32, i32
  }
  func.func @transform_1(%arg0: i32) -> (i32, i32) {
    %c0_i32 = arith.constant 0 : i32
    %c0_i32_0 = arith.constant 0 : i32
    %c0_i32_1 = arith.constant 0 : i32
    return %c0_i32, %c0_i32_0 : i32, i32
  }
  func.func @transform_2(%arg0: i32) -> (i32, i32) {
    %c0_i32 = arith.constant 0 : i32
    %c0_i32_0 = arith.constant 0 : i32
    %c0_i32_1 = arith.constant 0 : i32
    return %c0_i32, %c0_i32_0 : i32, i32
  }
  func.func @transform_3(%arg0: i32) -> (i32, i32) {
    %c0_i32 = arith.constant 0 : i32
    %c0_i32_0 = arith.constant 0 : i32
    %c0_i32_1 = arith.constant 0 : i32
    return %c0_i32, %c0_i32_0 : i32, i32
  }
  func.func @transform_4(%arg0: i32) -> (i32, i32) {
    %c0_i32 = arith.constant 0 : i32
    %c0_i32_0 = arith.constant 0 : i32
    %c0_i32_1 = arith.constant 0 : i32
    return %c0_i32, %c0_i32_0 : i32, i32
  }
  func.func @transform_5(%arg0: i32) -> (i32, i32) {
    %c0_i32 = arith.constant 0 : i32
    %c0_i32_0 = arith.constant 0 : i32
    %c0_i32_1 = arith.constant 0 : i32
    return %c0_i32, %c0_i32_0 : i32, i32
  }
  func.func @transform_6(%arg0: i32) -> (i32, i32) {
    %c0_i32 = arith.constant 0 : i32
    %c0_i32_0 = arith.constant 0 : i32
    %c0_i32_1 = arith.constant 0 : i32
    return %c0_i32, %c0_i32_0 : i32, i32
  }
  func.func @transform_7(%arg0: i32) -> (i32, i32) {
    %c0_i32 = arith.constant 0 : i32
    %c0_i32_0 = arith.constant 0 : i32
    return %c0_i32, %arg0 : i32, i32
  }
}

</mosaic_0001>

<bundles_post_ra>
// kernel: tpu_custom_call.1
= control target key start
LH: loop header
LB: loop body
LE: loop exit
PB: predicated region body
PF: predicated region fallthrough
CT: control target
= control target key end

     0   :  { %12 = vsyncpa [#allocation3], 0  ;;  %s2265_s0 = inlined_call_operand.vmem [shape: f32[1000,32], index: 0, kind: input, shape index: {}]   ;;  %s2266_s1 = inlined_call_operand.vmem [shape: bf16[64,32], index: 1, kind: input, shape index: {}]   ;;  %s2267_s2 = inlined_call_operand.vmem [shape: bf16[64,1], index: 2, kind: input, shape index: {}]   ;;  %s2268_s3 = inlined_call_operand.vmem [shape: bf16[64,64], index: 3, kind: input, shape index: {}]   ;;  %s2269_s4 = inlined_call_operand.vmem [shape: bf16[64,1], index: 4, kind: input, shape index: {}]   ;;  %s2270_s5 = inlined_call_operand.vmem [shape: bf16[16,64], index: 5, kind: input, shape index: {}]   ;;  %s2271_s6 = inlined_call_operand.vmem [shape: f32[16,1], index: 6, kind: input, shape index: {}]   ;;  %s2272_s7 = inlined_call_operand.hbm [shape: f32[16,1000], index: 7, kind: output, shape index: {}]  }
   0x1   :  { %14 = vsyncpa [#allocation3 + $0x1], 0  ;;  %s1749_s24 = smov 0   ;;  %s1751_s25 = smov 0  }
   0x2   :  { %s1753_s26 = smov 0   ;;  %s1755_s27 = smov 0  }
   0x3 LB: > { %s1770_s28 = sadd.s32 4294967295, %s1702_s27   ;;  %s1499_s29 = sadd.s32 4294967294, %s1702_s27   ;;  %s1702_s27 = sphi %s1755_s27, %s2278_s27   ;;  %s1698_s26 = sphi %s1753_s26, %s2277_s26   ;;  %s1694_s25 = sphi %s1751_s25, %s2276_s25   ;;  %s1690_s24 = sphi %s1749_s24, %s2275_s24  }
   0x4   : > { %s1774_s30 = sadd.s32 1, %s1702_s27   ;;  %s179_s8 = sadd.s32 1, %s1698_s26 }
   0x5   : > { %s176_s9 = ssub.s32 %s1702_s27, %s1774_s30  ;;  %p189_p0 = scmp.ne.s32.totalorder %s1698_s26, %s1694_s25 }
   0x6   : > { %p177_p1 = scmp.eq.s32.totalorder %s176_s9, 0  ;;  %p190_p2 = scmp.eq.s32.totalorder %s1770_s28, 1 }
   0x7   : > { %p195_p3 = scmp.ne.s32.totalorder %s1694_s25, %s1690_s24  ;;  %p196_p4 = scmp.eq.s32.totalorder %s1499_s29, 1 }
   0x8   : > { %s1785_s10 = scalar_select %p177_p1, %s1698_s26, %s179_s8  }
   0x9   : > { %p1787_p5 = por %p190_p2, %p189_p0  ;;  %p1791_p6 = por %p196_p4, %p195_p3 }
   0xa   : > { %p1502_p7 = scmp.ge.s32.totalorder %s1702_s27, 1  ;;  %p249_p8 = scmp.lt.s32.totalorder %s1702_s27, 3 }
   0xc   : > { %p250_p9 = pnand %p1502_p7, %p249_p8 }
   0xd   : > { %s1504_s13 = sshll.u32 (!%p250_p9), %s1770_s28, 6  ;;  %s282_s16 = sand.u32 (!%p250_p9), 1, %s1694_s25  }
   0xe   : > { %253 = sbr.rel (%p250_p9) target bundleno = 667 (0x29b), region = 48  ;;  %p290_p10 = scmp.lt.s32.totalorder (!%p250_p9), %s1504_s13, 124 }
   0xf   : > { %s1592_s19 = sshll.u32 (!%p250_p9), %s1770_s28, 5  ;;  %s1422_s28 = scalar_lea.sflag (!%p250_p9), [#allocation3], %s282_s16 }
  0x10   : > { %s1433_s22 = scalar_lea.hbm (!%p250_p9), %s2272_s7, %s1592_s19  ;;  %s1660_s15 = scalar_lea.hbm (!%p250_p9), %s2272_s7, 128 }
  0x11   : > { %s1436_s29 = sshll.u32 (!%p250_p9), %s1433_s22, 4  ;;  %s1437_s29 = int_to_ptr.hbm [resolvable:$true] %s1436_s29 }
  0x12   : > { %s1654_s8 = sshra.s32 (!%p250_p9), %s1437_s29, 4  ;;  %s1655_s8 = int_to_ptr.hbm [resolvable:$true] %s1654_s8 }
  0x13   : > { %s2280_s13 = smov (!%p290_p10, %s1504_s13), 124  ;;  %vm425_vm0 = vcmask 261120   ;;  %vm942_vm1 = vcmask 523264   ;;  %s1656_s9 = scalar_lea.hbm %s1655_s8, 64 }
  0x14   : > { %s1505_s14 = sshll.u32 %s2280_s13, 3  ;;  %p1657_p11 = scmp.ne.s32.totalorder %s1655_s8, %s1656_s9 }
  0x15   : > { %s1801_s17 = scalar_lea.vmem %s2265_s0, %s1505_s14  ;;  %p1661_p0 = scmp.lt.s32.totalorder %s1655_s8, %s2272_s7 }
  0x16   : > { %v315_v0 = vld [vmem:[%s1801_s17 + $0x70] sm:$0xff]  ;;  %v316_v1 = vld [vmem:[%s1801_s17 + $0x78] sm:$0xff]  ;;  %v313_v11 = vld [vmem:[%s1801_s17 + $0x60] sm:$0xff]  ;;  %p1658_p12 = pnand %p1657_p11, %p1787_p5  ;;  %p1662_p1 = scmp.lt.s32.totalorder %s1660_s15, %s1656_s9 }
  0x17   : > { %v331_v2 = vld [vmem:[%s1801_s17 + $0xf0] sm:$0xff]  ;;  %v372_v3 = vpack.c.bf16 %v316_v1, %v315_v0  ;;  %v332_v4 = vld [vmem:[%s1801_s17 + $0xf8] sm:$0xff]  ;;  %v314_v14 = vld [vmem:[%s1801_s17 + $0x68] sm:$0xff] }
  0x18   : > { %v347_v5 = vld [vmem:[%s1801_s17 + $0x170] sm:$0xff]  ;;  %v348_v6 = vld [vmem:[%s1801_s17 + $0x178] sm:$0xff]  ;;  %v380_v7 = vpack.c.bf16 %v332_v4, %v331_v2  ;;  %v329_v15 = vld [vmem:[%s1801_s17 + $0xe0] sm:$0xff]  ;;  %v371_v23 = vpack.c.bf16 %v314_v14, %v313_v11  ;;  %p1659_p13 = pneg %p1658_p12  ;;  %p1663_p2 = por %p1662_p1, %p1661_p0 }
  0x19   : > { %v388_v8 = vpack.c.bf16 %v348_v6, %v347_v5  ;;  %v363_v9 = vld [vmem:[%s1801_s17 + $0x1f0] sm:$0xff]  ;;  %v364_v10 = vld [vmem:[%s1801_s17 + $0x1f8] sm:$0xff]  ;;  %v460_v12 = vsel %vm425_vm0, %v372_v3, 0  ;;  %v330_v16 = vld [vmem:[%s1801_s17 + $0xe8] sm:$0xff] }
  0x1a   : > { %v396_v13 = vpack.c.bf16 %v364_v10, %v363_v9  ;;  %534 = vmatpush.bf16.xpose.msra.mxu0 %v460_v12  ;;  %v484_v17 = vsel %vm425_vm0, %v380_v7, 0  ;;  %v345_v19 = vld [vmem:[%s1801_s17 + $0x160] sm:$0xff]  ;;  %v346_v20 = vld [vmem:[%s1801_s17 + $0x168] sm:$0xff]  ;;  %v379_v25 = vpack.c.bf16 %v330_v16, %v329_v15  ;;  %v457_v28 = vsel %vm425_vm0, %v371_v23, 0  ;;  %v311_v31 = vld [vmem:[%s1801_s17 + $0x50] sm:$0xff]  ;;  %p1664_p3 = pnand %p1663_p2, %p1659_p13 }
  0x1b   : > { %v508_v18 = vsel %vm425_vm0, %v388_v8, 0  ;;  %v361_v21 = vld [vmem:[%s1801_s17 + $0x1e0] sm:$0xff]  ;;  %563 = vmatpush.bf16.xpose.msra.mxu1 %v484_v17  ;;  %v362_v24 = vld [vmem:[%s1801_s17 + $0x1e8] sm:$0xff]  ;;  %v387_v26 = vpack.c.bf16 %v346_v20, %v345_v19  ;;  %v312_v32 = vld [vmem:[%s1801_s17 + $0x58] sm:$0xff]  ;;  %v1704_v12 = vmov 0  }
  0x1c   : > { %592 = vmatpush.bf16.xpose.msra.mxu2 %v508_v18  ;;  %v532_v22 = vsel %vm425_vm0, %v396_v13, 0  ;;  %v395_v27 = vpack.c.bf16 %v362_v24, %v361_v21  ;;  %v481_v29 = vsel %vm425_vm0, %v379_v25, 0  ;;  %v327_v33 = vld [vmem:[%s1801_s17 + $0xd0] sm:$0xff]  ;;  %v328_v35 = vld [vmem:[%s1801_s17 + $0xd8] sm:$0xff]  ;;  %v370_v40 = vpack.c.bf16 %v312_v32, %v311_v31  ;;  %v309_v47 = vld [vmem:[%s1801_s17 + $0x40] sm:$0xff]  ;;  %1637 = vset.pattern.permute.xlu0 %v1704_v12 }
  0x1d   : > { %621 = vmatpush.bf16.xpose.msra.mxu3 %v532_v22  ;;  %v505_v30 = vsel %vm425_vm0, %v387_v26, 0  ;;  %v343_v36 = vld [vmem:[%s1801_s17 + $0x150] sm:$0xff]  ;;  %v344_v37 = vld [vmem:[%s1801_s17 + $0x158] sm:$0xff]  ;;  %v378_v41 = vpack.c.bf16 %v328_v35, %v327_v33  ;;  %v310_v48 = vld [vmem:[%s1801_s17 + $0x48] sm:$0xff]  ;;  %1638 = vset.pattern.permute.xlu1 %v1704_v12 }
  0x1e   : > { %v529_v34 = vsel %vm425_vm0, %v395_v27, 0  ;;  %v359_v38 = vld [vmem:[%s1801_s17 + $0x1d0] sm:$0xff]  ;;  %v360_v39 = vld [vmem:[%s1801_s17 + $0x1d8] sm:$0xff]  ;;  %v386_v42 = vpack.c.bf16 %v344_v37, %v343_v36  ;;  %v454_v44 = vsel %vm425_vm0, %v370_v40, 0  ;;  %v325_v49 = vld [vmem:[%s1801_s17 + $0xc0] sm:$0xff]  ;;  %v369_v56 = vpack.c.bf16 %v310_v48, %v309_v47  ;;  %1639 = vset.pattern.permute.xlu2 %v1704_v12 }
  0x1f   : > { %v394_v43 = vpack.c.bf16 %v360_v39, %v359_v38  ;;  %v478_v45 = vsel %vm425_vm0, %v378_v41, 0  ;;  %v326_v51 = vld [vmem:[%s1801_s17 + $0xc8] sm:$0xff]  ;;  %v341_v52 = vld [vmem:[%s1801_s17 + $0x140] sm:$0xff]  ;;  %v307_v63 = vld [vmem:[%s1801_s17 + $0x30] sm:$0xff] }
  0x20   : > { %v502_v46 = vsel %vm425_vm0, %v386_v42, 0  ;;  %v342_v53 = vld [vmem:[%s1801_s17 + $0x148] sm:$0xff]  ;;  %v357_v54 = vld [vmem:[%s1801_s17 + $0x1c0] sm:$0xff]  ;;  %v377_v57 = vpack.c.bf16 %v326_v51, %v325_v49  ;;  %v451_v60 = vsel %vm425_vm0, %v369_v56, 0  ;;  %v308_v0 = vld [vmem:[%s1801_s17 + $0x38] sm:$0xff] }
  0x21   : > { %v526_v50 = vsel %vm425_vm0, %v394_v43, 0  ;;  %v358_v55 = vld [vmem:[%s1801_s17 + $0x1c8] sm:$0xff]  ;;  %v385_v58 = vpack.c.bf16 %v342_v53, %v341_v52  ;;  %v323_v1 = vld [vmem:[%s1801_s17 + $0xb0] sm:$0xff]  ;;  %v324_v3 = vld [vmem:[%s1801_s17 + $0xb8] sm:$0xff]  ;;  %v368_v8 = vpack.c.bf16 %v308_v0, %v307_v63 }
  0x22   : > { %535 = vmatpush.bf16.xpose.msra.mxu0 %v457_v28  ;;  %v393_v59 = vpack.c.bf16 %v358_v55, %v357_v54  ;;  %v475_v61 = vsel %vm425_vm0, %v377_v57, 0  ;;  %v339_v4 = vld [vmem:[%s1801_s17 + $0x130] sm:$0xff]  ;;  %v340_v5 = vld [vmem:[%s1801_s17 + $0x138] sm:$0xff]  ;;  %v376_v9 = vpack.c.bf16 %v324_v3, %v323_v1  ;;  %v305_v16 = vld [vmem:[%s1801_s17 + $0x20] sm:$0xff] }
  0x23   : > { %564 = vmatpush.bf16.xpose.msra.mxu1 %v481_v29  ;;  %v499_v62 = vsel %vm425_vm0, %v385_v58, 0  ;;  %v355_v6 = vld [vmem:[%s1801_s17 + $0x1b0] sm:$0xff]  ;;  %v356_v7 = vld [vmem:[%s1801_s17 + $0x1b8] sm:$0xff]  ;;  %v384_v10 = vpack.c.bf16 %v340_v5, %v339_v4  ;;  %v448_v13 = vsel %vm425_vm0, %v368_v8, 0  ;;  %v306_v17 = vld [vmem:[%s1801_s17 + $0x28] sm:$0xff] }
  0x24   : > { %593 = vmatpush.bf16.xpose.msra.mxu2 %v505_v30  ;;  %v523_v2 = vsel %vm425_vm0, %v393_v59, 0  ;;  %v392_v11 = vpack.c.bf16 %v356_v7, %v355_v6  ;;  %v472_v14 = vsel %vm425_vm0, %v376_v9, 0  ;;  %v321_v18 = vld [vmem:[%s1801_s17 + $0xa0] sm:$0xff]  ;;  %v322_v20 = vld [vmem:[%s1801_s17 + $0xa8] sm:$0xff]  ;;  %v367_v25 = vpack.c.bf16 %v306_v17, %v305_v16  ;;  %v656_v26 = vld [vmem:[%s2267_s2 + $0x18] sm:$0xf] }
  0x25   : > { %622 = vmatpush.bf16.xpose.msra.mxu3 %v529_v34  ;;  %v496_v15 = vsel %vm425_vm0, %v384_v10, 0  ;;  %v337_v21 = vld [vmem:[%s1801_s17 + $0x120] sm:$0xff]  ;;  %v338_v22 = vld [vmem:[%s1801_s17 + $0x128] sm:$0xff]  ;;  %v654_v27 = vld [vmem:[%s2267_s2 + $0x10] sm:$0xf]  ;;  %v375_v28 = vpack.c.bf16 %v322_v20, %v321_v18  ;;  %730 = vperm.xlu0 %1637, %v656_v26  }
  0x26   : > { %v520_v19 = vsel %vm425_vm0, %v392_v11, 0  ;;  %v353_v23 = vld [vmem:[%s1801_s17 + $0x1a0] sm:$0xff]  ;;  %v354_v24 = vld [vmem:[%s1801_s17 + $0x1a8] sm:$0xff]  ;;  %v383_v29 = vpack.c.bf16 %v338_v22, %v337_v21  ;;  %712 = vperm.xlu1 %1638, %v654_v27   ;;  %v445_v31 = vsel %vm425_vm0, %v367_v25, 0  ;;  %v303_v32 = vld [vmem:[%s1801_s17 + $0x10] sm:$0xff] }
  0x27   : > { %v391_v30 = vpack.c.bf16 %v354_v24, %v353_v23  ;;  %v469_v33 = vsel %vm425_vm0, %v375_v28, 0  ;;  %v304_v35 = vld [vmem:[%s1801_s17 + $0x18] sm:$0xff]  ;;  %v319_v36 = vld [vmem:[%s1801_s17 + $0x90] sm:$0xff]  ;;  %v301_v51 = vld [vmem:[%s1801_s17] sm:$0xff] }
  0x28   : > { %v493_v34 = vsel %vm425_vm0, %v383_v29, 0  ;;  %v320_v37 = vld [vmem:[%s1801_s17 + $0x98] sm:$0xff]  ;;  %v335_v39 = vld [vmem:[%s1801_s17 + $0x110] sm:$0xff]  ;;  %v302_v52 = vld [vmem:[%s1801_s17 + $0x8] sm:$0xff] }
  0x29   : > { %v517_v38 = vsel %vm425_vm0, %v391_v30, 0  ;;  %v336_v40 = vld [vmem:[%s1801_s17 + $0x118] sm:$0xff]  ;;  %v351_v42 = vld [vmem:[%s1801_s17 + $0x190] sm:$0xff]  ;;  %v317_v53 = vld [vmem:[%s1801_s17 + $0x80] sm:$0xff] }
  0x2a   : > { %536 = vmatpush.bf16.xpose.msra.mxu0 %v454_v44  ;;  %v657_v41 = vld [vmem:[%s2267_s2 + $0x1c] sm:$0xf]  ;;  %v366_v44 = vpack.c.bf16 %v304_v35, %v303_v32  ;;  %v318_v55 = vld [vmem:[%s1801_s17 + $0x88] sm:$0xff]  ;;  %v333_v56 = vld [vmem:[%s1801_s17 + $0x100] sm:$0xff] }
  0x2b   : > { %565 = vmatpush.bf16.xpose.msra.mxu1 %v478_v45  ;;  %v352_v43 = vld [vmem:[%s1801_s17 + $0x198] sm:$0xff]  ;;  %v374_v45 = vpack.c.bf16 %v320_v37, %v319_v36  ;;  %v334_v57 = vld [vmem:[%s1801_s17 + $0x108] sm:$0xff]  ;;  %v349_v58 = vld [vmem:[%s1801_s17 + $0x180] sm:$0xff]  ;;  %v373_v63 = vpack.c.bf16 %v318_v55, %v317_v53 }
  0x2c   : > { %594 = vmatpush.bf16.xpose.msra.mxu2 %v502_v46  ;;  %v382_v46 = vpack.c.bf16 %v336_v40, %v335_v39  ;;  %v390_v47 = vpack.c.bf16 %v352_v43, %v351_v42  ;;  %v442_v48 = vsel %vm425_vm0, %v366_v44, 0  ;;  %v350_v59 = vld [vmem:[%s1801_s17 + $0x188] sm:$0xff]  ;;  %v381_v0 = vpack.c.bf16 %v334_v57, %v333_v56  ;;  %v651_v6 = vld [vmem:[%s2267_s2 + $0x4] sm:$0xf]  ;;  %v1078_v9 = vld [vmem:[%s2269_s4 + $0x1c] sm:$0xf] }
  0x2d   : > { %623 = vmatpush.bf16.xpose.msra.mxu3 %v526_v50  ;;  %739 = vperm.xlu0 %1637, %v657_v41   ;;  %v466_v49 = vsel %vm425_vm0, %v374_v45, 0  ;;  %v389_v1 = vpack.c.bf16 %v350_v59, %v349_v58  ;;  %v463_v3 = vsel %vm425_vm0, %v373_v63, 0  ;;  %v1583_v7 = vld [vmem:[%s2266_s1] sm:$0xff]  ;;  %v1584_v8 = vld [vmem:[%s2266_s1 + $0x8] sm:$0xff]  ;;  %v1075_v10 = vld [vmem:[%s2269_s4 + $0x10] sm:$0xf] }
  0x2e   : > { %v490_v50 = vsel %vm425_vm0, %v382_v46, 0  ;;  %v514_v54 = vsel %vm425_vm0, %v390_v47, 0  ;;  %v487_v4 = vsel %vm425_vm0, %v381_v0, 0  ;;  %v652_v11 = vld [vmem:[%s2267_s2 + $0x8] sm:$0xf]  ;;  %v1337_v17 = vld [vmem:[%s2271_s6] sm:$0xff] }
  0x2f   : > { %v511_v5 = vsel %vm425_vm0, %v389_v1, 0  ;;  %694 = vperm.xlu2 %1639, %v652_v11   ;;  %v1073_v12 = vld [vmem:[%s2269_s4 + $0x8] sm:$0xf]  ;;  %v1072_v16 = vld [vmem:[%s2269_s4 + $0x4] sm:$0xf]  ;;  %v1586_v20 = vld [vmem:[%s2266_s1 + $0x18] sm:$0xff] }
  0x30   : > { %v1077_v18 = vld [vmem:[%s2269_s4 + $0x18] sm:$0xf]  ;;  %v1071_v21 = vld [vmem:[%s2269_s4] sm:$0xf]  ;;  %v1338_v22 = vld [vmem:[%s2271_s6 + $0x8] sm:$0xff]  ;;  %s1503_s17 = sshll.u32 %s282_s16, 6 }
  0x31   : > { %v1705_v46 = vmov 839922192   ;;  %s284_s18 = scalar_lea.vmem [#allocation2], %s1503_s17 }
  0x32   : > { %537 = vmatpush.bf16.xpose.msra.mxu0 %v451_v60  ;;  %v365_v60 = vpack.c.bf16 %v302_v52, %v301_v51  ;;  %v680_v47 = vunpack.c.l.s4 %v1705_v46  ;;  %s1434_s23 = sshll.u32 %s284_s18, 4  ;;  %s1435_s23 = int_to_ptr.vmem [resolvable:$true] %s1434_s23 }
  0x33   : > { %566 = vmatpush.bf16.xpose.msra.mxu1 %v475_v61  ;;  %v655_v61 = vld [vmem:[%s2267_s2 + $0x14] sm:$0xf] }
  0x34   : > { %595 = vmatpush.bf16.xpose.msra.mxu2 %v499_v62  ;;  %v650_v62 = vld [vmem:[%s2267_s2] sm:$0xf]  ;;  %721 = vperm.xlu1 %1638, %v655_v61  }
  0x35   : > { %624 = vmatpush.bf16.xpose.msra.mxu3 %v523_v2  ;;  %676 = vperm.xlu0 %1637, %v650_v62   ;;  %v439_v2 = vsel %vm425_vm0, %v365_v60, 0 }
  0x3a   : > { %538 = vmatpush.bf16.xpose.msra.mxu0 %v448_v13  ;;  %v1074_v13 = vld [vmem:[%s2269_s4 + $0xc] sm:$0xf] }
  0x3b   : > { %567 = vmatpush.bf16.xpose.msra.mxu1 %v472_v14  ;;  %v653_v14 = vld [vmem:[%s2267_s2 + $0xc] sm:$0xf] }
  0x3c   : > { %596 = vmatpush.bf16.xpose.msra.mxu2 %v496_v15  ;;  %685 = vperm.xlu1 %1638, %v651_v6   ;;  %v1585_v15 = vld [vmem:[%s2266_s1 + $0x10] sm:$0xff] }
  0x3d   : > { %625 = vmatpush.bf16.xpose.msra.mxu3 %v520_v19  ;;  %1160 = vperm.xlu0 %1637, %v1078_v9   ;;  %v1076_v19 = vld [vmem:[%s2269_s4 + $0x14] sm:$0xf] }
  0x3e   : > { %703 = vperm.xlu2 %1639, %v653_v14  }
  0x42   : > { %539 = vmatpush.bf16.xpose.msra.mxu0 %v445_v31 }
  0x43   : > { %568 = vmatpush.bf16.xpose.msra.mxu1 %v469_v33 }
  0x44   : > { %597 = vmatpush.bf16.xpose.msra.mxu2 %v493_v34  ;;  %1133 = vperm.xlu1 %1638, %v1075_v10  }
  0x45   : > { %626 = vmatpush.bf16.xpose.msra.mxu3 %v517_v38  ;;  %1115 = vperm.xlu0 %1637, %v1073_v12  }
  0x46   : > { %1151 = vperm.xlu2 %1639, %v1077_v18  }
  0x4a   : > { %540 = vmatpush.bf16.xpose.msra.mxu0 %v442_v48 }
  0x4b   : > { %569 = vmatpush.bf16.xpose.msra.mxu1 %v466_v49 }
  0x4c   : > { %598 = vmatpush.bf16.xpose.msra.mxu2 %v490_v50  ;;  %1124 = vperm.xlu1 %1638, %v1074_v13   ;;  %v1991_v50 = vunpack.c.0.s8 %v680_v47 }
  0x4d   : > { %627 = vmatpush.bf16.xpose.msra.mxu3 %v514_v54  ;;  %1106 = vperm.xlu0 %1637, %v1072_v16  }
  0x4e   : > { %1142 = vperm.xlu2 %1639, %v1076_v19  }
  0x52   : > { %541 = vmatpush.bf16.xpose.msra.mxu0 %v439_v2 }
  0x53   : > { %570 = vmatpush.bf16.xpose.msra.mxu1 %v463_v3 }
  0x54   : > { %599 = vmatpush.bf16.xpose.msra.mxu2 %v487_v4  ;;  %1341 = vperm.xlu1 %1638, %v1337_v17  }
  0x55   : > { %628 = vmatpush.bf16.xpose.msra.mxu3 %v511_v5 }
  0x56   : > { %1097 = vperm.xlu2 %1639, %v1071_v21  }
  0x59   : > { %1522 = vmatmul.msk.bf16.vlgmr.msra.gmra.mxu0 %vm425_vm0, %v1583_v7 }
  0x5a   : > { %1526 = vmatmul.msk.bf16.vlgmr.msra.gmra.mxu1 %vm425_vm0, %v1583_v7 }
  0x5b   : > { %1530 = vmatmul.msk.bf16.vlgmr.msra.gmra.mxu2 %vm425_vm0, %v1583_v7 }
  0x5c   : > { %1534 = vmatmul.msk.bf16.vlgmr.msra.gmra.mxu3 %vm425_vm0, %v1583_v7 }
  0x5e   : > { %1346 = vperm.xlu2 %1639, %v1338_v22  }
  0x69   : > { %1523 = vmatmul.msk.bf16.gmra.mxu0 %vm425_vm0, %v1584_v8 }
  0x6a   : > { %1527 = vmatmul.msk.bf16.gmra.mxu1 %vm425_vm0, %v1584_v8 }
  0x6b   : > { %1531 = vmatmul.msk.bf16.gmra.mxu2 %vm425_vm0, %v1584_v8 }
  0x6c   : > { %1535 = vmatmul.msk.bf16.gmra.mxu3 %vm425_vm0, %v1584_v8 }
  0x79   : > { %1524 = vmatmul.msk.bf16.gmra.mxu0 %vm425_vm0, %v1585_v15 }
  0x7a   : > { %1528 = vmatmul.msk.bf16.gmra.mxu1 %vm425_vm0, %v1585_v15 }
  0x7b   : > { %1532 = vmatmul.msk.bf16.gmra.mxu2 %vm425_vm0, %v1585_v15 }
  0x7c   : > { %1536 = vmatmul.msk.bf16.gmra.mxu3 %vm425_vm0, %v1585_v15 }
  0x89   : > { %1525 = vmatmul.msk.bf16.gmra.mxu0 %vm425_vm0, %v1586_v20  ;;  %v695_v49 = vpop.permute.xlu2 %694 }
  0x8a   : > { %1529 = vmatmul.msk.bf16.gmra.mxu1 %vm425_vm0, %v1586_v20  ;;  %v700_v1 = vperm.slane %v695_v49, %v1991_v50 }
  0x8b   : > { %1533 = vmatmul.msk.bf16.gmra.mxu2 %vm425_vm0, %v1586_v20 }
  0x8c   : > { %1537 = vmatmul.msk.bf16.gmra.mxu3 %vm425_vm0, %v1586_v20  ;;  %v2016_v18 = vunpack.c.l.bf16 %v700_v1 }
  0x97   : > { %v731_v35 = vpop.permute.xlu0 %730 }
  0x98   : > { %v713_v39 = vpop.permute.xlu1 %712  ;;  %v736_v58 = vperm.slane %v731_v35, %v1991_v50  ;;  %v704_v61 = vpop.permute.xlu2 %703 }
  0x99   : > { %v718_v63 = vperm.slane %v713_v39, %v1991_v50  ;;  %v709_v8 = vperm.slane %v704_v61, %v1991_v50 }
  0x9a   : > { %v2007_v11 = vunpack.c.l.bf16 %v736_v58 }
  0x9b   : > { %v2014_v17 = vunpack.c.l.bf16 %v718_v63 }
  0x9f   : > { %v740_v41 = vpop.permute.xlu0 %739 }
  0xa0   : > { %v745_v62 = vperm.slane %v740_v41, %v1991_v50 }
  0xa2   : > { %v2012_v16 = vunpack.c.l.bf16 %v745_v62 }
  0xa6   : > { %v722_v48 = vpop.permute.xlu1 %721 }
  0xa7   : > { %v677_v51 = vpop.permute.xlu0 %676  ;;  %v727_v2 = vperm.slane %v722_v48, %v1991_v50 }
  0xa8   : > { %v682_v56 = vperm.slane %v677_v51, %v1991_v50 }
  0xa9   : > { %v2021_v20 = vunpack.c.l.bf16 %v727_v2 }
  0xaa   : > { %v2003_v3 = vunpack.c.l.bf16 %v682_v56 }
  0xae   : > { %v686_v60 = vpop.permute.xlu1 %685 }
  0xaf   : > { %v691_v6 = vperm.slane %v686_v60, %v1991_v50 }
  0xd6   : > { %v543_v23 = vpop.f32.mrf.mxu0 }
  0xd7   : > { %v572_v24 = vpop.f32.mrf.mxu1 }
  0xd8   : > { %v658_v25 = vpack.c.bf16 %v572_v24, %v543_v23  ;;  %v2023_v24 = vunpack.c.l.bf16 %v691_v6 }
  0xda   : > { %v746_v59 = vunpack.c.l.bf16 %v658_v25  ;;  %v747_v0 = vunpack.c.h.bf16 %v658_v25  ;;  %v2025_v25 = vunpack.c.l.bf16 %v709_v8 }
  0xdc   : > { %v2010_v15 = vadd.f32 %v2003_v3, %v746_v59  ;;  %v2019_v19 = vadd.f32 %v2003_v3, %v747_v0 }
  0xde   : > { %v601_v26 = vpop.f32.mrf.mxu2  ;;  %v545_v28 = vpop.f32.mrf.mxu0 }
  0xdf   : > { %v630_v27 = vpop.f32.mrf.mxu3  ;;  %v574_v30 = vpop.f32.mrf.mxu1 }
  0xe0   : > { %v1981_v29 = vpack.c.bf16 %v630_v27, %v601_v26  ;;  %v660_v4 = vpack.c.bf16 %v574_v30, %v545_v28 }
  0xe2   : > { %v750_v21 = vunpack.c.l.bf16 %v660_v4  ;;  %v751_v22 = vunpack.c.h.bf16 %v660_v4  ;;  %v748_v35 = vunpack.c.l.bf16 %v1981_v29 }
  0xe4   : > { %v2040_v46 = vadd.f32 %v2023_v24, %v750_v21 }
  0xe6   : > { %v1983_v31 = vpop.f32.mrf.mxu2  ;;  %v548_v33 = vpop.f32.mrf.mxu0 }
  0xe7   : > { %v1985_v32 = vpop.f32.mrf.mxu3  ;;  %v577_v34 = vpop.f32.mrf.mxu1 }
  0xe8   : > { %v662_v57 = vpack.c.bf16 %v577_v34, %v548_v33  ;;  %v866_v34 = vmax.f32 %v2010_v15, 0.0  ;;  %v1587_v15 = vld [vmem:[%s2268_s3] sm:$0xff] }
  0xea   : > { %v754_v7 = vunpack.c.l.bf16 %v662_v57  ;;  %v755_v12 = vunpack.c.h.bf16 %v662_v57 }
  0xec   : > { %v2028_v27 = vadd.f32 %v2016_v18, %v754_v7  ;;  %v2033_v33 = vadd.f32 %v2016_v18, %v755_v12 }
  0xee   : > { %v606_v36 = vpop.f32.mrf.mxu2  ;;  %v550_v38 = vpop.f32.mrf.mxu0  ;;  %v875_v59 = vmax.f32 %v2033_v33, 0.0 }
  0xef   : > { %v635_v37 = vpop.f32.mrf.mxu3  ;;  %v579_v40 = vpop.f32.mrf.mxu1 }
  0xf0   : > { %v664_v23 = vpack.c.bf16 %v579_v40, %v550_v38  ;;  %v2030_v28 = vpack.c.bf16 %v635_v37, %v606_v36  ;;  %v749_v38 = vunpack.c.h.bf16 %v1981_v29  ;;  %v867_v40 = vmax.f32 %v2019_v19, 0.0 }
  0xf1   : > { %v2043_v36 = vadd.f32 %v2023_v24, %v751_v22  ;;  %v2047_v37 = vpack.c.bf16 %v1985_v32, %v1983_v31 }
  0xf2   : > { %v758_v41 = vunpack.c.l.bf16 %v664_v23  ;;  %v759_v56 = vunpack.c.h.bf16 %v664_v23  ;;  %v757_v60 = vunpack.c.h.bf16 %v2030_v28 }
  0xf4   : > { %v2058_v1 = vadd.f32 %v2025_v25, %v758_v41 }
  0xf6   : > { %v1987_v42 = vpop.f32.mrf.mxu2  ;;  %v553_v44 = vpop.f32.mrf.mxu0 }
  0xf7   : > { %v1989_v43 = vpop.f32.mrf.mxu3  ;;  %v582_v45 = vpop.f32.mrf.mxu1 }
  0xf8   : > { %v666_v13 = vpack.c.bf16 %v582_v45, %v553_v44  ;;  %v665_v8 = vpack.c.bf16 %v1989_v43, %v1987_v42 }
  0xfa   : > { %v762_v30 = vunpack.c.l.bf16 %v666_v13  ;;  %v763_v44 = vunpack.c.h.bf16 %v666_v13  ;;  %v799_v13 = vadd.f32 %v2025_v25, %v759_v56 }
  0xfc   : > { %v802_v58 = vadd.f32 %v2014_v17, %v762_v30  ;;  %v803_v0 = vadd.f32 %v2014_v17, %v763_v44 }
  0xfe   : > { %v1993_v52 = vpop.f32.mrf.mxu2  ;;  %v555_v54 = vpop.f32.mrf.mxu0  ;;  %v882_v12 = vmax.f32 %v802_v58, 0.0 }
  0xff   : > { %v1995_v53 = vpop.f32.mrf.mxu3  ;;  %v584_v55 = vpop.f32.mrf.mxu1 }
 0x100   : > { %v668_v39 = vpack.c.bf16 %v584_v55, %v555_v54  ;;  %v874_v54 = vmax.f32 %v2028_v27, 0.0  ;;  %v756_v55 = vunpack.c.l.bf16 %v2030_v28  ;;  %v667_v32 = vpack.c.bf16 %v1995_v53, %v1993_v52 }
 0x101   : > { %v797_v27 = vadd.f32 %v2016_v18, %v757_v60  ;;  %v788_v60 = vadd.f32 %v2003_v3, %v748_v35  ;;  %v1588_v35 = vld [vmem:[%s2268_s3 + $0x8] sm:$0xff] }
 0x102   : > { %v766_v61 = vunpack.c.l.bf16 %v668_v39  ;;  %v767_v62 = vunpack.c.h.bf16 %v668_v39  ;;  %v764_v22 = vunpack.c.l.bf16 %v667_v32  ;;  %v883_v39 = vmax.f32 %v803_v0, 0.0 }
 0x103   : > { %v761_v0 = vunpack.c.h.bf16 %v665_v8 }
 0x104   : > { %v807_v21 = vadd.f32 %v2021_v20, %v767_v62 }
 0x106   : > { %v613_v5 = vpop.f32.mrf.mxu2  ;;  %v558_v10 = vpop.f32.mrf.mxu0 }
 0x107   : > { %v642_v9 = vpop.f32.mrf.mxu3  ;;  %v587_v14 = vpop.f32.mrf.mxu1 }
 0x108   : > { %v670_v26 = vpack.c.bf16 %v587_v14, %v558_v10  ;;  %v669_v10 = vpack.c.bf16 %v642_v9, %v613_v5  ;;  %v806_v14 = vadd.f32 %v2021_v20, %v766_v61  ;;  %v765_v9 = vunpack.c.h.bf16 %v667_v32 }
 0x109   : > { %v879_v32 = vmax.f32 %v799_v13, 0.0  ;;  %v753_v13 = vunpack.c.h.bf16 %v2047_v37 }
 0x10a   : > { %v770_v47 = vunpack.c.l.bf16 %v670_v26  ;;  %v771_v48 = vunpack.c.h.bf16 %v670_v26  ;;  %v886_v56 = vmax.f32 %v806_v14, 0.0  ;;  %v804_v14 = vadd.f32 %v2014_v17, %v764_v22 }
 0x10c   : > { %v810_v6 = vadd.f32 %v2007_v11, %v770_v47  ;;  %v811_v7 = vadd.f32 %v2007_v11, %v771_v48  ;;  %v769_v47 = vunpack.c.h.bf16 %v669_v10 }
 0x10e   : > { %v616_v45 = vpop.f32.mrf.mxu2  ;;  %v560_v51 = vpop.f32.mrf.mxu0  ;;  %v890_v44 = vmax.f32 %v810_v6, 0.0  ;;  %v891_v43 = vmax.f32 %v811_v7, 0.0 }
 0x10f   : > { %v645_v49 = vpop.f32.mrf.mxu3  ;;  %v589_v57 = vpop.f32.mrf.mxu1 }
 0x110   : > { %v672_v31 = vpack.c.bf16 %v589_v57, %v560_v51  ;;  %v671_v63 = vpack.c.bf16 %v645_v49, %v616_v45  ;;  %v768_v45 = vunpack.c.l.bf16 %v669_v10  ;;  %v887_v57 = vmax.f32 %v807_v21, 0.0 }
 0x111   : > { %v809_v10 = vadd.f32 %v2021_v20, %v769_v47  ;;  %v868_v47 = vmax.f32 %v788_v60, 0.0 }
 0x112   : > { %v774_v2 = vunpack.c.l.bf16 %v672_v31  ;;  %v775_v4 = vunpack.c.h.bf16 %v672_v31  ;;  %v772_v23 = vunpack.c.l.bf16 %v671_v63  ;;  %v773_v26 = vunpack.c.h.bf16 %v671_v63 }
 0x113   : > { %v760_v63 = vunpack.c.l.bf16 %v665_v8  ;;  %v808_v7 = vadd.f32 %v2021_v20, %v768_v45  ;;  %v801_v20 = vadd.f32 %v2025_v25, %v761_v0  ;;  %v889_v22 = vmax.f32 %v809_v10, 0.0  ;;  %v1152_v10 = vpop.permute.xlu2 %1151 }
 0x114   : > { %v814_v52 = vadd.f32 %v2012_v16, %v774_v2  ;;  %v815_v53 = vadd.f32 %v2012_v16, %v775_v4  ;;  %v812_v62 = vadd.f32 %v2007_v11, %v772_v23  ;;  %v813_v31 = vadd.f32 %v2007_v11, %v773_v26 }
 0x115   : > { %v878_v2 = vmax.f32 %v2058_v1, 0.0  ;;  %v805_v11 = vadd.f32 %v2014_v17, %v765_v9  ;;  %v752_v1 = vunpack.c.l.bf16 %v2047_v37  ;;  %v871_v37 = vmax.f32 %v2043_v36, 0.0 }
 0x116   : > { %v618_v30 = vpop.f32.mrf.mxu2  ;;  %v894_v42 = vmax.f32 %v814_v52, 0.0  ;;  %v895_v5 = vmax.f32 %v815_v53, 0.0  ;;  %v906_v52 = vpack.c.bf16 %v886_v56, %v882_v12  ;;  %v907_v53 = vpack.c.bf16 %v887_v57, %v883_v39 }
 0x117   : > { %v647_v41 = vpop.f32.mrf.mxu3  ;;  %v892_v8 = vmax.f32 %v812_v62, 0.0  ;;  %v893_v23 = vmax.f32 %v813_v31, 0.0  ;;  %v888_v39 = vmax.f32 %v808_v7, 0.0  ;;  %v902_v17 = vpack.c.bf16 %v878_v2, %v874_v54 }
 0x118   : > { %v673_v48 = vpack.c.bf16 %v647_v41, %v618_v30  ;;  %v910_v49 = vpack.c.bf16 %v894_v42, %v890_v44  ;;  %v911_v51 = vpack.c.bf16 %v895_v5, %v891_v43  ;;  %v903_v41 = vpack.c.bf16 %v879_v32, %v875_v59 }
 0x119   : > { %v870_v44 = vmax.f32 %v2040_v46, 0.0  ;;  %v884_v42 = vmax.f32 %v804_v14, 0.0  ;;  %v885_v43 = vmax.f32 %v805_v11, 0.0  ;;  %v792_v33 = vadd.f32 %v2023_v24, %v752_v1 }
 0x11a   : > { %v776_v58 = vunpack.c.l.bf16 %v673_v48  ;;  %v777_v61 = vunpack.c.h.bf16 %v673_v48  ;;  %959 = vmatpush.bf16.msrb.mxu0 %v910_v49  ;;  %988 = vmatpush.bf16.msrb.mxu1 %v911_v51  ;;  %v793_v46 = vadd.f32 %v2023_v24, %v753_v13  ;;  %v881_v5 = vmax.f32 %v801_v20, 0.0  ;;  %v1590_v49 = vld [vmem:[%s2268_s3 + $0x18] sm:$0xff]  ;;  %v1134_v20 = vpop.permute.xlu1 %1133 }
 0x11b   : > { %v908_v54 = vpack.c.bf16 %v888_v39, %v884_v42  ;;  %v909_v36 = vpack.c.bf16 %v889_v22, %v885_v43  ;;  %v898_v9 = vpack.c.bf16 %v870_v44, %v866_v34  ;;  %v789_v24 = vadd.f32 %v2003_v3, %v749_v38  ;;  %v1589_v38 = vld [vmem:[%s2268_s3 + $0x10] sm:$0xff] }
 0x11c   : > { %v816_v4 = vadd.f32 %v2012_v16, %v776_v58  ;;  %v817_v6 = vadd.f32 %v2012_v16, %v777_v61  ;;  %v800_v16 = vadd.f32 %v2025_v25, %v760_v63  ;;  %v796_v25 = vadd.f32 %v2016_v18, %v756_v55 }
 0x11d   : > { %v899_v55 = vpack.c.bf16 %v871_v37, %v867_v40  ;;  %v877_v18 = vmax.f32 %v797_v27, 0.0  ;;  %v872_v19 = vmax.f32 %v792_v33, 0.0  ;;  %v873_v45 = vmax.f32 %v793_v46, 0.0 }
 0x11e   : > { %v896_v21 = vmax.f32 %v816_v4, 0.0  ;;  %v897_v26 = vmax.f32 %v817_v6, 0.0  ;;  %960 = vmatpush.bf16.msrb.mxu0 %v906_v52  ;;  %989 = vmatpush.bf16.msrb.mxu1 %v907_v53  ;;  %v880_v59 = vmax.f32 %v800_v16, 0.0  ;;  %v876_v28 = vmax.f32 %v796_v25, 0.0  ;;  %v1161_v52 = vpop.permute.xlu0 %1160 }
 0x11f   : > { %v905_v40 = vpack.c.bf16 %v881_v5, %v877_v18  ;;  %v869_v48 = vmax.f32 %v789_v24, 0.0  ;;  %v900_v29 = vpack.c.bf16 %v872_v19, %v868_v47  ;;  %v1166_v43 = vperm.slane %v1161_v52, %v1991_v50 }
 0x120   : > { %v912_v12 = vpack.c.bf16 %v896_v21, %v892_v8  ;;  %v913_v30 = vpack.c.bf16 %v897_v26, %v893_v23  ;;  %v904_v34 = vpack.c.bf16 %v880_v59, %v876_v28  ;;  %v1143_v26 = vpop.permute.xlu2 %1142  ;;  %v1139_v25 = vperm.slane %v1134_v20, %v1991_v50 }
 0x121   : > { %v901_v3 = vpack.c.bf16 %v873_v45, %v869_v48  ;;  %v2167_v24 = vunpack.c.l.bf16 %v1166_v43 }
 0x122   : > { %1017 = vmatpush.bf16.msrb.mxu2 %v912_v12  ;;  %1046 = vmatpush.bf16.msrb.mxu3 %v913_v30  ;;  %v1125_v59 = vpop.permute.xlu1 %1124 }
 0x123   : > { %961 = vmatpush.bf16.msrb.mxu0 %v902_v17  ;;  %990 = vmatpush.bf16.msrb.mxu1 %v903_v41  ;;  %v1157_v17 = vperm.slane %v1152_v10, %v1991_v50 }
 0x125   : > { %v2162_v5 = vunpack.c.l.bf16 %v1157_v17 }
 0x126   : > { %1018 = vmatpush.bf16.msrb.mxu2 %v908_v54  ;;  %1047 = vmatpush.bf16.msrb.mxu3 %v909_v36  ;;  %v1116_v1 = vpop.permute.xlu0 %1115  ;;  %v1148_v54 = vperm.slane %v1143_v26, %v1991_v50 }
 0x127   : > { %962 = vmatpush.bf16.msrb.mxu0 %v898_v9  ;;  %991 = vmatpush.bf16.msrb.mxu1 %v899_v55  ;;  %v1121_v36 = vperm.slane %v1116_v1, %v1991_v50  ;;  %v1130_v9 = vperm.slane %v1125_v59, %v1991_v50 }
 0x128   : > { %v1098_v39 = vpop.permute.xlu2 %1097 }
 0x129   : > { %v1103_v41 = vperm.slane %v1098_v39, %v1991_v50 }
 0x12a   : > { %1019 = vmatpush.bf16.msrb.mxu2 %v904_v34  ;;  %1048 = vmatpush.bf16.msrb.mxu3 %v905_v40 }
 0x12b   : > { %1554 = vmatmul.msk.bf16.vlgmr.msrb.gmra.mxu0 %vm942_vm1, %v1587_v15  ;;  %1558 = vmatmul.msk.bf16.vlgmr.msrb.gmra.mxu1 %vm942_vm1, %v1587_v15  ;;  %v2165_v55 = vunpack.c.l.bf16 %v1103_v41 }
 0x12e   : > { %1020 = vmatpush.bf16.msrb.mxu2 %v900_v29  ;;  %1049 = vmatpush.bf16.msrb.mxu3 %v901_v3  ;;  %v1107_v22 = vpop.permute.xlu0 %1106  ;;  %v2175_v29 = vunpack.c.l.bf16 %v1148_v54 }
 0x12f   : > { %v1112_v27 = vperm.slane %v1107_v22, %v1991_v50  ;;  %v2177_v50 = vunpack.c.l.bf16 %v1121_v36 }
 0x131   : > { %1562 = vmatmul.msk.bf16.vlgmr.msrb.gmra.mxu2 %vm942_vm1, %v1587_v15  ;;  %1566 = vmatmul.msk.bf16.vlgmr.msrb.gmra.mxu3 %vm942_vm1, %v1587_v15  ;;  %v2169_v15 = vunpack.c.l.bf16 %v1139_v25  ;;  %v2172_v40 = vunpack.c.l.bf16 %v1112_v27 }
 0x13b   : > { %1555 = vmatmul.msk.bf16.gmra.mxu0 %vm942_vm1, %v1588_v35  ;;  %1559 = vmatmul.msk.bf16.gmra.mxu1 %vm942_vm1, %v1588_v35 }
 0x141   : > { %1563 = vmatmul.msk.bf16.gmra.mxu2 %vm942_vm1, %v1588_v35  ;;  %1567 = vmatmul.msk.bf16.gmra.mxu3 %vm942_vm1, %v1588_v35 }
 0x14b   : > { %1556 = vmatmul.msk.bf16.gmra.mxu0 %vm942_vm1, %v1589_v38  ;;  %1560 = vmatmul.msk.bf16.gmra.mxu1 %vm942_vm1, %v1589_v38 }
 0x151   : > { %1564 = vmatmul.msk.bf16.gmra.mxu2 %vm942_vm1, %v1589_v38  ;;  %1568 = vmatmul.msk.bf16.gmra.mxu3 %vm942_vm1, %v1589_v38  ;;  %v2179_v38 = vunpack.c.l.bf16 %v1130_v9 }
 0x15b   : > { %1557 = vmatmul.msk.bf16.gmra.mxu0 %vm942_vm1, %v1590_v49  ;;  %1561 = vmatmul.msk.bf16.gmra.mxu1 %vm942_vm1, %v1590_v49 }
 0x161   : > { %1565 = vmatmul.msk.bf16.gmra.mxu2 %vm942_vm1, %v1590_v49  ;;  %1569 = vmatmul.msk.bf16.gmra.mxu3 %vm942_vm1, %v1590_v49 }
 0x1a8   : > { %v964_v51 = vpop.f32.mrf.mxu0  ;;  %v993_v56 = vpop.f32.mrf.mxu1 }
 0x1a9   : > { %v2134_v57 = vpack.c.bf16 %v993_v56, %v964_v51 }
 0x1ab   : > { %v1167_v33 = vunpack.c.l.bf16 %v2134_v57  ;;  %v1168_v19 = vunpack.c.h.bf16 %v2134_v57 }
 0x1ad   : > { %v1207_v45 = vadd.f32 %v2165_v55, %v1167_v33 }
 0x1af   : > { %v1287_v52 = vmax.f32 %v1207_v45, 0.0 }
 0x1b0   : > { %v966_v58 = vpop.f32.mrf.mxu0  ;;  %v995_v61 = vpop.f32.mrf.mxu1 }
 0x1b1   : > { %v1081_v44 = vpack.c.bf16 %v995_v61, %v966_v58  ;;  %v1208_v61 = vadd.f32 %v2165_v55, %v1168_v19 }
 0x1b3   : > { %v1171_v28 = vunpack.c.l.bf16 %v1081_v44  ;;  %v1172_v3 = vunpack.c.h.bf16 %v1081_v44 }
 0x1b4   : > { %v1022_v62 = vpop.f32.mrf.mxu2  ;;  %v1051_v31 = vpop.f32.mrf.mxu3 }
 0x1b5   : > { %v2136_v63 = vpack.c.bf16 %v1051_v31, %v1022_v62  ;;  %v1211_v49 = vadd.f32 %v2172_v40, %v1171_v28  ;;  %v1212_v1 = vadd.f32 %v2172_v40, %v1172_v3  ;;  %v1288_v3 = vmax.f32 %v1208_v61, 0.0 }
 0x1b7   : > { %v1292_v59 = vmax.f32 %v1212_v1, 0.0 }
 0x1b8   : > { %v969_v0 = vpop.f32.mrf.mxu0  ;;  %v998_v2 = vpop.f32.mrf.mxu1 }
 0x1b9   : > { %v1083_v51 = vpack.c.bf16 %v998_v2, %v969_v0  ;;  %v1291_v0 = vmax.f32 %v1211_v49, 0.0  ;;  %v1320_v1 = vpack.c.bf16 %v1292_v59, %v1288_v3 }
 0x1bb   : > { %v1175_v2 = vunpack.c.l.bf16 %v1083_v51 }
 0x1bc   : > { %v2138_v32 = vpop.f32.mrf.mxu2  ;;  %v2140_v4 = vpop.f32.mrf.mxu3 }
 0x1bd   : > { %v1215_v9 = vadd.f32 %v2177_v50, %v1175_v2 }
 0x1c0   : > { %v971_v6 = vpop.f32.mrf.mxu0  ;;  %v1000_v7 = vpop.f32.mrf.mxu1 }
 0x1c1   : > { %v1085_v56 = vpack.c.bf16 %v1000_v7, %v971_v6 }
 0x1c3   : > { %v1179_v6 = vunpack.c.l.bf16 %v1085_v56  ;;  %v1180_v7 = vunpack.c.h.bf16 %v1085_v56 }
 0x1c4   : > { %v2142_v53 = vpop.f32.mrf.mxu2  ;;  %v2144_v14 = vpop.f32.mrf.mxu3 }
 0x1c5   : > { %v1219_v28 = vadd.f32 %v2179_v38, %v1179_v6  ;;  %v1220_v19 = vadd.f32 %v2179_v38, %v1180_v7 }
 0x1c8   : > { %v974_v11 = vpop.f32.mrf.mxu0  ;;  %v1003_v8 = vpop.f32.mrf.mxu1 }
 0x1c9   : > { %v1087_v47 = vpack.c.bf16 %v1003_v8, %v974_v11 }
 0x1cb   : > { %v1183_v11 = vunpack.c.l.bf16 %v1087_v47  ;;  %v1184_v8 = vunpack.c.h.bf16 %v1087_v47 }
 0x1cc   : > { %v2146_v21 = vpop.f32.mrf.mxu2  ;;  %v2148_v23 = vpop.f32.mrf.mxu3 }
 0x1cd   : > { %v1223_v43 = vadd.f32 %v2169_v15, %v1183_v11  ;;  %v1224_v25 = vadd.f32 %v2169_v15, %v1184_v8 }
 0x1cf   : > { %v1303_v56 = vmax.f32 %v1223_v43, 0.0 }
 0x1d0   : > { %v976_v13 = vpop.f32.mrf.mxu0  ;;  %v1005_v16 = vpop.f32.mrf.mxu1 }
 0x1d1   : > { %v1089_v34 = vpack.c.bf16 %v1005_v16, %v976_v13 }
 0x1d3   : > { %v1187_v62 = vunpack.c.l.bf16 %v1089_v34  ;;  %v1188_v31 = vunpack.c.h.bf16 %v1089_v34 }
 0x1d4   : > { %v2150_v12 = vpop.f32.mrf.mxu2  ;;  %v2152_v30 = vpop.f32.mrf.mxu3 }
 0x1d5   : > { %v1227_v17 = vadd.f32 %v2175_v29, %v1187_v62  ;;  %v1228_v41 = vadd.f32 %v2175_v29, %v1188_v31  ;;  %v1295_v31 = vmax.f32 %v1215_v9, 0.0  ;;  %v1088_v11 = vpack.c.bf16 %v2152_v30, %v2150_v12 }
 0x1d6   : > { %v1082_v12 = vpack.c.bf16 %v2140_v4, %v2138_v32  ;;  %v1084_v30 = vpack.c.bf16 %v2144_v14, %v2142_v53 }
 0x1d7   : > { %v1307_v34 = vmax.f32 %v1227_v17, 0.0  ;;  %v1308_v45 = vmax.f32 %v1228_v41, 0.0  ;;  %v1186_v17 = vunpack.c.h.bf16 %v1088_v11 }
 0x1d8   : > { %v979_v37 = vpop.f32.mrf.mxu0  ;;  %v1008_v42 = vpop.f32.mrf.mxu1  ;;  %v1177_v53 = vunpack.c.l.bf16 %v1084_v30  ;;  %v1178_v14 = vunpack.c.h.bf16 %v1084_v30 }
 0x1d9   : > { %v1091_v46 = vpack.c.bf16 %v1008_v42, %v979_v37  ;;  %v1176_v42 = vunpack.c.h.bf16 %v1083_v51  ;;  %v1319_v51 = vpack.c.bf16 %v1291_v0, %v1287_v52 }
 0x1db   : > { %v1191_v48 = vunpack.c.l.bf16 %v1091_v46  ;;  %v1192_v35 = vunpack.c.h.bf16 %v1091_v46 }
 0x1dc   : > { %v1034_v18 = vpop.f32.mrf.mxu2  ;;  %v1063_v60 = vpop.f32.mrf.mxu3 }
 0x1dd   : > { %v1231_v26 = vadd.f32 %v2162_v5, %v1191_v48  ;;  %v1232_v13 = vadd.f32 %v2162_v5, %v1192_v35  ;;  %v1216_v35 = vadd.f32 %v2177_v50, %v1176_v42  ;;  %v1090_v49 = vpack.c.bf16 %v1063_v60, %v1034_v18 }
 0x1de   : > { %v1086_v60 = vpack.c.bf16 %v2148_v23, %v2146_v21 }
 0x1df   : > { %v1311_v27 = vmax.f32 %v1231_v26, 0.0  ;;  %v1312_v33 = vmax.f32 %v1232_v13, 0.0  ;;  %v1300_v13 = vmax.f32 %v1220_v19, 0.0  ;;  %v1296_v18 = vmax.f32 %v1216_v35, 0.0 }
 0x1e0   : > { %v981_v57 = vpop.f32.mrf.mxu0  ;;  %v1010_v58 = vpop.f32.mrf.mxu1  ;;  %v1189_v52 = vunpack.c.l.bf16 %v1090_v49  ;;  %v1190_v0 = vunpack.c.h.bf16 %v1090_v49 }
 0x1e1   : > { %v1093_v10 = vpack.c.bf16 %v1010_v58, %v981_v57  ;;  %v1304_v57 = vmax.f32 %v1224_v25, 0.0 }
 0x1e2   : > { %v1229_v42 = vadd.f32 %v2175_v29, %v1189_v52  ;;  %v1230_v43 = vadd.f32 %v2175_v29, %v1190_v0  ;;  %v1347_v52 = vpop.permute.xlu2 %1346 }
 0x1e3   : > { %v1195_v16 = vunpack.c.l.bf16 %v1093_v10  ;;  %v1196_v20 = vunpack.c.h.bf16 %v1093_v10  ;;  %v1299_v10 = vmax.f32 %v1219_v28, 0.0 }
 0x1e4   : > { %v1037_v39 = vpop.f32.mrf.mxu2  ;;  %v1066_v22 = vpop.f32.mrf.mxu3  ;;  %v1309_v28 = vmax.f32 %v1229_v42, 0.0  ;;  %v1310_v19 = vmax.f32 %v1230_v43, 0.0 }
 0x1e5   : > { %v1235_v44 = vadd.f32 %v2167_v24, %v1195_v16  ;;  %v1236_v37 = vadd.f32 %v2167_v24, %v1196_v20  ;;  %v1092_v36 = vpack.c.bf16 %v1066_v22, %v1037_v39  ;;  %v1327_v16 = vpack.c.bf16 %v1307_v34, %v1303_v56  ;;  %v1591_v34 = vld [vmem:[%s2270_s5] sm:$0xff] }
 0x1e6   : > { %v1328_v20 = vpack.c.bf16 %v1308_v45, %v1304_v57  ;;  %v1185_v22 = vunpack.c.l.bf16 %v1088_v11  ;;  %v1323_v41 = vpack.c.bf16 %v1299_v10, %v1295_v31  ;;  %v1169_v45 = vunpack.c.l.bf16 %v2136_v63 }
 0x1e7   : > { %v1315_v46 = vmax.f32 %v1235_v44, 0.0  ;;  %v1316_v54 = vmax.f32 %v1236_v37, 0.0  ;;  %v1193_v58 = vunpack.c.l.bf16 %v1092_v36  ;;  %v1194_v62 = vunpack.c.h.bf16 %v1092_v36 }
 0x1e8   : > { %v1324_v44 = vpack.c.bf16 %v1300_v13, %v1296_v18  ;;  %v1181_v37 = vunpack.c.l.bf16 %v1086_v60 }
 0x1e9   : > { %v1331_v47 = vpack.c.bf16 %v1315_v46, %v1311_v27  ;;  %v1332_v48 = vpack.c.bf16 %v1316_v54, %v1312_v33  ;;  %v1233_v2 = vadd.f32 %v2162_v5, %v1193_v58  ;;  %v1234_v6 = vadd.f32 %v2162_v5, %v1194_v62 }
 0x1ea   : > { %v1182_v5 = vunpack.c.h.bf16 %v1086_v60  ;;  %v1225_v33 = vadd.f32 %v2169_v15, %v1185_v22  ;;  %v1173_v46 = vunpack.c.l.bf16 %v1082_v12  ;;  %v1174_v54 = vunpack.c.h.bf16 %v1082_v12 }
 0x1eb   : > { %1361 = vmatpush.bf16.msra.mxu0 %v1331_v47  ;;  %1375 = vmatpush.bf16.msra.mxu1 %v1332_v48  ;;  %v1313_v25 = vmax.f32 %v1233_v2, 0.0  ;;  %v1314_v27 = vmax.f32 %v1234_v6, 0.0  ;;  %v1221_v9 = vadd.f32 %v2179_v38, %v1181_v37  ;;  %v1170_v47 = vunpack.c.h.bf16 %v2136_v63 }
 0x1ec   : > { %v1039_v8 = vpop.f32.mrf.mxu2  ;;  %v1068_v26 = vpop.f32.mrf.mxu3  ;;  %v1222_v29 = vadd.f32 %v2179_v38, %v1182_v5  ;;  %v1218_v48 = vadd.f32 %v2177_v50, %v1178_v14  ;;  %v1305_v3 = vmax.f32 %v1225_v33, 0.0  ;;  %v1213_v38 = vadd.f32 %v2172_v40, %v1173_v46 }
 0x1ed   : > { %v1094_v61 = vpack.c.bf16 %v1068_v26, %v1039_v8  ;;  %v1214_v49 = vadd.f32 %v2172_v40, %v1174_v54  ;;  %v1301_v56 = vmax.f32 %v1221_v9, 0.0  ;;  %v1209_v58 = vadd.f32 %v2165_v55, %v1169_v45 }
 0x1ee   : > { %v1302_v57 = vmax.f32 %v1222_v29, 0.0  ;;  %v1329_v63 = vpack.c.bf16 %v1309_v28, %v1305_v3  ;;  %v1298_v31 = vmax.f32 %v1218_v48, 0.0  ;;  %v1293_v10 = vmax.f32 %v1213_v38, 0.0 }
 0x1ef   : > { %v1197_v7 = vunpack.c.l.bf16 %v1094_v61  ;;  %v1198_v39 = vunpack.c.h.bf16 %v1094_v61  ;;  %1362 = vmatpush.bf16.msra.mxu0 %v1327_v16  ;;  %1376 = vmatpush.bf16.msra.mxu1 %v1328_v20  ;;  %v1294_v40 = vmax.f32 %v1214_v49, 0.0  ;;  %v1289_v26 = vmax.f32 %v1209_v58, 0.0 }
 0x1f0   : > { %v1326_v8 = vpack.c.bf16 %v1302_v57, %v1298_v31 }
 0x1f1   : > { %v1237_v21 = vadd.f32 %v2167_v24, %v1197_v7  ;;  %v1238_v23 = vadd.f32 %v2167_v24, %v1198_v39  ;;  %v1226_v24 = vadd.f32 %v2169_v15, %v1186_v17  ;;  %v1217_v15 = vadd.f32 %v2177_v50, %v1177_v53 }
 0x1f2   : > { %v1210_v50 = vadd.f32 %v2165_v55, %v1170_v47  ;;  %v1321_v13 = vpack.c.bf16 %v1293_v10, %v1289_v26  ;;  %v1342_v55 = vpop.permute.xlu1 %1341 }
 0x1f3   : > { %v1317_v32 = vmax.f32 %v1237_v21, 0.0  ;;  %v1318_v4 = vmax.f32 %v1238_v23, 0.0  ;;  %1363 = vmatpush.bf16.msra.mxu0 %v1323_v41  ;;  %1377 = vmatpush.bf16.msra.mxu1 %v1324_v44  ;;  %v1306_v35 = vmax.f32 %v1226_v24, 0.0  ;;  %v1297_v62 = vmax.f32 %v1217_v15, 0.0 }
 0x1f5   : > { %v1333_v36 = vpack.c.bf16 %v1317_v32, %v1313_v25  ;;  %v1334_v59 = vpack.c.bf16 %v1318_v4, %v1314_v27  ;;  %v1325_v11 = vpack.c.bf16 %v1301_v56, %v1297_v62 }
 0x1f7   : > { %1364 = vmatpush.bf16.msra.mxu0 %v1319_v51  ;;  %1378 = vmatpush.bf16.msra.mxu1 %v1320_v1  ;;  %v1330_v51 = vpack.c.bf16 %v1310_v19, %v1306_v35  ;;  %v1290_v1 = vmax.f32 %v1210_v50, 0.0 }
 0x1f8   : > { %1389 = vmatpush.bf16.msra.mxu2 %v1333_v36  ;;  %1403 = vmatpush.bf16.msra.mxu3 %v1334_v59 }
 0x1f9   : > { %v1322_v61 = vpack.c.bf16 %v1294_v40, %v1290_v1 }
 0x1fa   : > { %1574 = vmatmul.msk.bf16.vlgmr.msra.gmra.mxu0 %vm942_vm1, %v1591_v34  ;;  %1575 = vmatmul.msk.bf16.vlgmr.msra.gmra.mxu1 %vm942_vm1, %v1591_v34 }
 0x1fc   : > { %1390 = vmatpush.bf16.msra.mxu2 %v1329_v63  ;;  %1404 = vmatpush.bf16.msra.mxu3 %v1330_v51 }
 0x200   : > { %1391 = vmatpush.bf16.msra.mxu2 %v1325_v11  ;;  %1405 = vmatpush.bf16.msra.mxu3 %v1326_v8 }
 0x204   : > { %1392 = vmatpush.bf16.msra.mxu2 %v1321_v13  ;;  %1406 = vmatpush.bf16.msra.mxu3 %v1322_v61 }
 0x207   : > { %1576 = vmatmul.msk.bf16.vlgmr.msra.gmra.mxu2 %vm942_vm1, %v1591_v34  ;;  %1577 = vmatmul.msk.bf16.vlgmr.msra.gmra.mxu3 %vm942_vm1, %v1591_v34 }
 0x277   : > { %v1366_v16 = vpop.f32.mrf.mxu0  ;;  %v1380_v20 = vpop.f32.mrf.mxu1 }
 0x278   : > { %v1367_v18 = vadd.f32 %v1366_v16, %v1342_v55  ;;  %v1381_v60 = vadd.f32 %v1380_v20, %v1342_v55 }
 0x27a   : > { %1413 = vst [vmem:[%s284_s18] sm:$0xff] %v1367_v18 }
 0x27b   : > { %1414 = vst [vmem:[%s284_s18 + $0x8] sm:$0xff] %v1381_v60 }
 0x27f   : > { %v1368_v0 = vpop.f32.mrf.mxu0  ;;  %v1382_v2 = vpop.f32.mrf.mxu1 }
 0x280   : > { %v1369_v6 = vadd.f32 %v1368_v0, %v1347_v52  ;;  %v1383_v7 = vadd.f32 %v1382_v2, %v1347_v52 }
 0x282   : > { %1417 = vst [vmem:[%s284_s18 + $0x20] sm:$0xff] %v1369_v6 }
 0x283   : > { %1418 = vst [vmem:[%s284_s18 + $0x28] sm:$0xff] %v1383_v7 }
 0x28a   : > { %v1394_v39 = vpop.f32.mrf.mxu2  ;;  %v1408_v12 = vpop.f32.mrf.mxu3 }
 0x28b   : > { %v1395_v30 = vadd.f32 %v1394_v39, %v1342_v55  ;;  %v1409_v22 = vadd.f32 %v1408_v12, %v1342_v55 }
 0x28d   : > { %1415 = vst [vmem:[%s284_s18 + $0x10] sm:$0xff] %v1395_v30 }
 0x28e   : > { %1416 = vst [vmem:[%s284_s18 + $0x18] sm:$0xff] %v1409_v22 }
 0x292   : > { %v1396_v17 = vpop.f32.mrf.mxu2  ;;  %v1410_v21 = vpop.f32.mrf.mxu3 }
 0x293   : > { %v1397_v23 = vadd.f32 %v1396_v17, %v1347_v52  ;;  %v1411_v41 = vadd.f32 %v1410_v21, %v1347_v52 }
 0x295   : > { %1419 = vst [vmem:[%s284_s18 + $0x30] sm:$0xff] %v1397_v23 }
 0x296   : > { %1420 = vst [vmem:[%s284_s18 + $0x38] sm:$0xff] %v1411_v41 }
 0x297   : > { %1667 = shalt.err (!%p1664_p3)
}
 0x298   : > { %s1706_s16 = smov 512   ;;  %s1707_s18 = smov 1024  }
 0x299   : > { %s1708_s20 = smov 32  }
 0x29a   : > { %1593 = dma.vmem_to_hbm [thread:$0]  (%p1787_p5), %s1435_s23, 1024, %s1437_s29, %s1422_s28, %s1706_s16, %s1707_s18, %s1708_s20  }
 0x29b PF: > { %p1599_p4 = scmp.ge.s32.totalorder %s1702_s27, 2  ;;  %s1451_s21 = sand.u32 1, %s1690_s24  }
 0x29c   : > { %s1452_s22 = scalar_lea.sflag [#allocation3], %s1451_s21 }
 0x29d   : > { %p1596_p7 = pnand %p1599_p4, %p1791_p6 }
 0x29f   : > { %p1597_p8 = pneg %p1596_p7 }
 0x2a1   : > { %1685 = dma.done.wait (%p1597_p8), %s1452_s22, 1024  }
 0x2a2   : > { %1687 = vsyncadd (%p1597_p8), %s1452_s22, 4294966272  ;;  %p17_p9 = scmp.ge.s32.totalorder %s1774_s30, 4   ;;  %s2275_s24 = smov %s1694_s25 }
 0x2a3   : > { %s2276_s25 = smov %s1698_s26  ;;  %s2277_s26 = smov %s1785_s10 }
 0x2a4   : > { %s2278_s27 = smov %s1774_s30  ;;  %19 = sbr.rel (!%p17_p9) target bundleno = 3 (0x3), region = 83 }
 0x2a9   :  { %1458 = vsyncpa [#allocation3], 1 }
 0x2aa   :  { %1460 = vsyncpa [#allocation3 + $0x1], 1 }

</bundles_post_ra>
